<compile_context>
chip_gen: v6e
topology: v6e:2x2x1
jax: 0.10.0
libtpu: 0.0.40
codegen_flags: <defaults>
</compile_context>

<pallas_src>
import jax
import jax.numpy as jnp
from jax.experimental import pallas as pl
from jax.experimental.pallas import tpu as pltpu

# Hyperparameters (hp.mel_freq / hp.embedding_size), kept small & synthetic.
MEL_FREQ = 32
EMBEDDING_SIZE = 64
LANE_PAD = 128          # lane-dense padded width for hidden / output
DEFAULT_TILE_M = 512    # rows per grid step (multiple of 8)

# lowbias32 mixer constants (expressed as int32-range Python ints).
_MIX1 = 0x7FEB352D
_MIX2 = 0x846CA68B - (1 << 32)
_SALT1 = 0x3C6EF35F     # dropout stream salt, layer 1
_SALT2 = 0x27D4EB2F     # dropout stream salt, layer 2


def _round_up(x, n):
    return ((x + n - 1) // n) * n


def _keep_mask(seed, salt, shape, row_offset):
    """Bernoulli(0.5) keep-mask from a counter-based integer hash (lowbias32).

    Pure int32 VPU ops (iota / xor / shift / mul / cmp) so it lowers under
    Mosaic and in interpret mode alike.  Logical right shifts are emulated as
    (arithmetic shift) & mask, which is bit-exact vs. the uint32 mixer.  The
    per-element counter uses *global* (row, col) indices, so different M-tiles
    draw disjoint parts of the stream even though the seed is shared.
    """
    rows = jax.lax.broadcasted_iota(jnp.int32, shape, 0) + row_offset
    cols = jax.lax.broadcasted_iota(jnp.int32, shape, 1)
    x = rows * shape[1] + cols            # global element id
    x = x ^ seed ^ salt
    x = x ^ ((x >> 16) & 0xFFFF)
    x = x * _MIX1
    x = x ^ ((x >> 15) & 0x1FFFF)
    x = x * _MIX2
    x = x ^ ((x >> 16) & 0xFFFF)
    return x < 0                          # top bit -> P(keep) = 0.5


def prenet_kernel(seed_ref, x_ref, w1_ref, b1_ref, w2_ref, b2_ref, o_ref):
    tile_m = o_ref.shape[0]
    row0 = pl.program_id(0) * tile_m      # global row offset of this tile
    seed = seed_ref[0]

    # ---- linear_1 + relu + dropout(0.5) ---------------------------------
    x = x_ref[...].astype(jnp.bfloat16)   # bf16 MXU inputs, f32 accumulation
    h = jnp.dot(x, w1_ref[...], preferred_element_type=jnp.float32) + b1_ref[...]
    h = jnp.maximum(h, 0.0)
    # the 1/(1-p)=2.0 rescale of this dropout is folded into w2 (wrapper)
    h = jnp.where(_keep_mask(seed, _SALT1, h.shape, row0), h, 0.0)

    # ---- linear_2 + relu + dropout(0.5) ---------------------------------
    h2 = jnp.dot(h.astype(jnp.bfloat16), w2_ref[...],
                 preferred_element_type=jnp.float32) + b2_ref[...]
    h2 = jnp.maximum(h2, 0.0)
    h2 = jnp.where(_keep_mask(seed, _SALT2, h2.shape, row0), h2 * 2.0, 0.0)

    o_ref[...] = h2.astype(o_ref.dtype)   # lane-dense (tile_m, 128) store


def decoder_prenet(x, w1, b1, w2, b2, seed, *, tile_m=DEFAULT_TILE_M):
    """x: (batch, seq, MEL_FREQ) f32.  w1:(F,E) b1:(1,E) w2:(E,E) b2:(1,E).

    Weights are stored transposed vs. torch's nn.Linear ((in, out) layout) so
    the hot path is plain x @ w.  Returns (batch, seq, EMBEDDING_SIZE) f32.
    """
    batch, seq, mel = x.shape
    assert mel == MEL_FREQ
    E, H = EMBEDDING_SIZE, LANE_PAD
    m = batch * seq

    # ---- lane-dense parameter padding (tiny, done once per call) --------
    w1p = jnp.zeros((mel, H), jnp.float32).at[:, :E].set(w1).astype(jnp.bfloat16)
    b1p = jnp.zeros((1, H), jnp.float32).at[:, :E].set(b1)
    # fold the first dropout's 1/(1-p) = 2.0 rescale into w2
    w2p = jnp.zeros((H, H), jnp.float32).at[:E, :E].set(w2 * 2.0).astype(jnp.bfloat16)
    b2p = jnp.zeros((1, H), jnp.float32).at[:, :E].set(b2)

    # ---- flatten and pad M to a multiple of the row tile -----------------
    tm = min(tile_m, _round_up(m, 8))
    m_pad = _round_up(m, tm)
    x2d = x.reshape(m, mel)
    if m_pad != m:
        x2d = jnp.pad(x2d, ((0, m_pad - m), (0, 0)))

    seed_arr = jnp.asarray([seed], dtype=jnp.int32)

    grid_spec = pltpu.PrefetchScalarGridSpec(
        num_scalar_prefetch=1,                 # seed lives in SMEM
        grid=(m_pad // tm,),
        in_specs=[
            pl.BlockSpec((tm, mel), lambda i, s: (i, 0)),   # x tile (streamed)
            pl.BlockSpec((mel, H), lambda i, s: (0, 0)),    # w1 (resident)
            pl.BlockSpec((1, H), lambda i, s: (0, 0)),      # b1
            pl.BlockSpec((H, H), lambda i, s: (0, 0)),      # w2
            pl.BlockSpec((1, H), lambda i, s: (0, 0)),      # b2
        ],
        out_specs=pl.BlockSpec((tm, H), lambda i, s: (i, 0)),
    )

    out_pad = pl.pallas_call(
        prenet_kernel,
        out_shape=jax.ShapeDtypeStruct((m_pad, H), jnp.float32),
        grid_spec=grid_spec,
        compiler_params=pltpu.CompilerParams(
            dimension_semantics=("parallel",)),   # megacore-shardable M loop
    )(seed_arr, x2d, w1p, b1p, w2p, b2p)

    return out_pad[:m, :E].reshape(batch, seq, E)


def reference_prenet(x, w1, b1, w2, b2, seed):
    """Pure-JAX replica of the kernel math (same masks / padding / bf16)."""
    batch, seq, mel = x.shape
    E, H = EMBEDDING_SIZE, LANE_PAD
    m = batch * seq
    w1p = jnp.zeros((mel, H), jnp.float32).at[:, :E].set(w1).astype(jnp.bfloat16)
    b1p = jnp.zeros((1, H), jnp.float32).at[:, :E].set(b1)
    w2p = jnp.zeros((H, H), jnp.float32).at[:E, :E].set(w2 * 2.0).astype(jnp.bfloat16)
    b2p = jnp.zeros((1, H), jnp.float32).at[:, :E].set(b2)
    s = jnp.int32(seed)
    x2d = x.reshape(m, mel).astype(jnp.bfloat16)
    h = jnp.dot(x2d, w1p, preferred_element_type=jnp.float32) + b1p
    h = jnp.maximum(h, 0.0)
    h = jnp.where(_keep_mask(s, _SALT1, h.shape, 0), h, 0.0)
    h2 = jnp.dot(h.astype(jnp.bfloat16), w2p, preferred_element_type=jnp.float32) + b2p
    h2 = jnp.maximum(h2, 0.0)
    h2 = jnp.where(_keep_mask(s, _SALT2, h2.shape, 0), h2 * 2.0, 0.0)
    return h2[:, :E].reshape(batch, seq, E)


def init_linear_params(key, in_features, out_features):
    """PyTorch nn.Linear default init: U(-1/sqrt(in), 1/sqrt(in))."""
    kw, kb = jax.random.split(key)
    bound = 1.0 / (in_features ** 0.5)
    w = jax.random.uniform(kw, (in_features, out_features), jnp.float32,
                           minval=-bound, maxval=bound)
    b = jax.random.uniform(kb, (1, out_features), jnp.float32,
                           minval=-bound, maxval=bound)
    return w, b


if __name__ == "__main__":
    key = jax.random.PRNGKey(0)
    kx, k1, k2 = jax.random.split(key, 3)

    batch, seq = 2, 8
    x = jax.random.normal(kx, (batch, seq, MEL_FREQ), jnp.float32)

    w1, b1 = init_linear_params(k1, MEL_FREQ, EMBEDDING_SIZE)
    w2, b2 = init_linear_params(k2, EMBEDDING_SIZE, EMBEDDING_SIZE)

    seed = 1234   # caller should vary this per forward step for fresh dropout

    out = decoder_prenet(x, w1, b1, w2, b2, seed)
    jax.block_until_ready(out)

    assert out.shape == (batch, seq, EMBEDDING_SIZE)
    assert bool(jnp.isfinite(out).all())
    assert bool(jnp.all(out >= 0.0))      # post-relu, post-dropout: non-negative

    ref = reference_prenet(x, w1, b1, w2, b2, seed)
    assert bool(jnp.allclose(out, ref, atol=1e-2, rtol=1e-2))

    print("KERNEL_OK")
</pallas_src>

<mosaic_0001>
module attributes {stable_mosaic.version = 11 : i64} {
  func.func @prenet_kernel(%arg0: i32, %arg1: memref<1xi32, #tpu.memory_space<smem>>, %arg2: memref<16x32xf32, #tpu.memory_space<vmem>>, %arg3: memref<32x128xbf16, #tpu.memory_space<vmem>>, %arg4: memref<1x128xf32, #tpu.memory_space<vmem>>, %arg5: memref<128x128xbf16, #tpu.memory_space<vmem>>, %arg6: memref<1x128xf32, #tpu.memory_space<vmem>>, %arg7: memref<16x128xf32, #tpu.memory_space<vmem>>) attributes {dimension_semantics = [#tpu.dimension_semantics<parallel>], iteration_bounds = array<i64: 1>, scalar_prefetch = 1 : i64, scratch_operands = 0 : i64, tpu.core_type = #tpu.core_type<tc>, window_params = [{transform_indices = @transform_0, window_bounds = array<i64: 16, 32>}, {pipeline_mode = #tpu.pipeline_mode<synchronous>, transform_indices = @transform_1, window_bounds = array<i64: 32, 128>}, {pipeline_mode = #tpu.pipeline_mode<synchronous>, transform_indices = @transform_2, window_bounds = array<i64: 1, 128>}, {pipeline_mode = #tpu.pipeline_mode<synchronous>, transform_indices = @transform_3, window_bounds = array<i64: 128, 128>}, {pipeline_mode = #tpu.pipeline_mode<synchronous>, transform_indices = @transform_4, window_bounds = array<i64: 1, 128>}, {transform_indices = @transform_5, window_bounds = array<i64: 16, 128>}]} {
    %c16_i32 = arith.constant 16 : i32
    %0 = arith.muli %arg0, %c16_i32 : i32
    %c0 = arith.constant 0 : index
    %1 = memref.load %arg1[%c0] : memref<1xi32, #tpu.memory_space<smem>>
    %c0_0 = arith.constant 0 : index
    %c0_1 = arith.constant 0 : index
    %2 = vector.load %arg2[%c0_0, %c0_1] : memref<16x32xf32, #tpu.memory_space<vmem>>, vector<16x32xf32>
    %3 = arith.truncf %2 : vector<16x32xf32> to vector<16x32xbf16>
    %c0_2 = arith.constant 0 : index
    %c0_3 = arith.constant 0 : index
    %4 = vector.load %arg3[%c0_2, %c0_3] : memref<32x128xbf16, #tpu.memory_space<vmem>>, vector<32x128xbf16>
    %cst = arith.constant dense<0.000000e+00> : vector<16x128xf32>
    %5 = tpu.matmul %3, %4, %cst {dimension_numbers = #tpu.dot_dimension_numbers<[1], [0], [0], [1], [0, 0, 1, 1], [], []>} : vector<16x32xbf16>, vector<32x128xbf16>, vector<16x128xf32> -> vector<16x128xf32>
    %c0_4 = arith.constant 0 : index
    %c0_5 = arith.constant 0 : index
    %6 = vector.load %arg4[%c0_4, %c0_5] : memref<1x128xf32, #tpu.memory_space<vmem>>, vector<1x128xf32>
    %7 = vector.broadcast %6 : vector<1x128xf32> to vector<16x128xf32>
    %8 = arith.addf %5, %7 : vector<16x128xf32>
    %cst_6 = arith.constant 0.000000e+00 : f32
    %9 = vector.broadcast %cst_6 : f32 to vector<16x128xf32>
    %10 = arith.maximumf %8, %9 : vector<16x128xf32>
    %11 = tpu.iota {dimensions = array<i32: 0>} : vector<16x128xi32>
    %12 = vector.broadcast %0 : i32 to vector<16x128xi32>
    %13 = arith.addi %11, %12 : vector<16x128xi32>
    %14 = tpu.iota {dimensions = array<i32: 1>} : vector<16x128xi32>
    %c128_i32 = arith.constant 128 : i32
    %15 = vector.broadcast %c128_i32 : i32 to vector<16x128xi32>
    %16 = arith.muli %13, %15 : vector<16x128xi32>
    %17 = arith.addi %16, %14 : vector<16x128xi32>
    %18 = vector.broadcast %1 : i32 to vector<16x128xi32>
    %19 = arith.xori %17, %18 : vector<16x128xi32>
    %c1013904223_i32 = arith.constant 1013904223 : i32
    %20 = vector.broadcast %c1013904223_i32 : i32 to vector<16x128xi32>
    %21 = arith.xori %19, %20 : vector<16x128xi32>
    %c16_i32_7 = arith.constant 16 : i32
    %22 = vector.broadcast %c16_i32_7 : i32 to vector<16x128xi32>
    %23 = arith.shrsi %21, %22 : vector<16x128xi32>
    %c65535_i32 = arith.constant 65535 : i32
    %24 = vector.broadcast %c65535_i32 : i32 to vector<16x128xi32>
    %25 = arith.andi %23, %24 : vector<16x128xi32>
    %26 = arith.xori %21, %25 : vector<16x128xi32>
    %c2146121005_i32 = arith.constant 2146121005 : i32
    %27 = vector.broadcast %c2146121005_i32 : i32 to vector<16x128xi32>
    %28 = arith.muli %26, %27 : vector<16x128xi32>
    %c15_i32 = arith.constant 15 : i32
    %29 = vector.broadcast %c15_i32 : i32 to vector<16x128xi32>
    %30 = arith.shrsi %28, %29 : vector<16x128xi32>
    %c131071_i32 = arith.constant 131071 : i32
    %31 = vector.broadcast %c131071_i32 : i32 to vector<16x128xi32>
    %32 = arith.andi %30, %31 : vector<16x128xi32>
    %33 = arith.xori %28, %32 : vector<16x128xi32>
    %c-2073254261_i32 = arith.constant -2073254261 : i32
    %34 = vector.broadcast %c-2073254261_i32 : i32 to vector<16x128xi32>
    %35 = arith.muli %33, %34 : vector<16x128xi32>
    %c16_i32_8 = arith.constant 16 : i32
    %36 = vector.broadcast %c16_i32_8 : i32 to vector<16x128xi32>
    %37 = arith.shrsi %35, %36 : vector<16x128xi32>
    %c65535_i32_9 = arith.constant 65535 : i32
    %38 = vector.broadcast %c65535_i32_9 : i32 to vector<16x128xi32>
    %39 = arith.andi %37, %38 : vector<16x128xi32>
    %40 = arith.xori %35, %39 : vector<16x128xi32>
    %c0_i32 = arith.constant 0 : i32
    %41 = vector.broadcast %c0_i32 : i32 to vector<16x128xi32>
    %42 = arith.cmpi slt, %40, %41 : vector<16x128xi32>
    %cst_10 = arith.constant 0.000000e+00 : f32
    %43 = vector.broadcast %cst_10 : f32 to vector<16x128xf32>
    %44 = arith.select %42, %10, %43 : vector<16x128xi1>, vector<16x128xf32>
    %45 = arith.truncf %44 : vector<16x128xf32> to vector<16x128xbf16>
    %c0_11 = arith.constant 0 : index
    %c0_12 = arith.constant 0 : index
    %46 = vector.load %arg5[%c0_11, %c0_12] : memref<128x128xbf16, #tpu.memory_space<vmem>>, vector<128x128xbf16>
    %cst_13 = arith.constant dense<0.000000e+00> : vector<16x128xf32>
    %47 = tpu.matmul %45, %46, %cst_13 {dimension_numbers = #tpu.dot_dimension_numbers<[1], [0], [0], [1], [0, 0, 1, 1], [], []>} : vector<16x128xbf16>, vector<128x128xbf16>, vector<16x128xf32> -> vector<16x128xf32>
    %c0_14 = arith.constant 0 : index
    %c0_15 = arith.constant 0 : index
    %48 = vector.load %arg6[%c0_14, %c0_15] : memref<1x128xf32, #tpu.memory_space<vmem>>, vector<1x128xf32>
    %49 = vector.broadcast %48 : vector<1x128xf32> to vector<16x128xf32>
    %50 = arith.addf %47, %49 : vector<16x128xf32>
    %cst_16 = arith.constant 0.000000e+00 : f32
    %51 = vector.broadcast %cst_16 : f32 to vector<16x128xf32>
    %52 = arith.maximumf %50, %51 : vector<16x128xf32>
    %53 = tpu.iota {dimensions = array<i32: 0>} : vector<16x128xi32>
    %54 = vector.broadcast %0 : i32 to vector<16x128xi32>
    %55 = arith.addi %53, %54 : vector<16x128xi32>
    %56 = tpu.iota {dimensions = array<i32: 1>} : vector<16x128xi32>
    %c128_i32_17 = arith.constant 128 : i32
    %57 = vector.broadcast %c128_i32_17 : i32 to vector<16x128xi32>
    %58 = arith.muli %55, %57 : vector<16x128xi32>
    %59 = arith.addi %58, %56 : vector<16x128xi32>
    %60 = vector.broadcast %1 : i32 to vector<16x128xi32>
    %61 = arith.xori %59, %60 : vector<16x128xi32>
    %c668265263_i32 = arith.constant 668265263 : i32
    %62 = vector.broadcast %c668265263_i32 : i32 to vector<16x128xi32>
    %63 = arith.xori %61, %62 : vector<16x128xi32>
    %c16_i32_18 = arith.constant 16 : i32
    %64 = vector.broadcast %c16_i32_18 : i32 to vector<16x128xi32>
    %65 = arith.shrsi %63, %64 : vector<16x128xi32>
    %c65535_i32_19 = arith.constant 65535 : i32
    %66 = vector.broadcast %c65535_i32_19 : i32 to vector<16x128xi32>
    %67 = arith.andi %65, %66 : vector<16x128xi32>
    %68 = arith.xori %63, %67 : vector<16x128xi32>
    %c2146121005_i32_20 = arith.constant 2146121005 : i32
    %69 = vector.broadcast %c2146121005_i32_20 : i32 to vector<16x128xi32>
    %70 = arith.muli %68, %69 : vector<16x128xi32>
    %c15_i32_21 = arith.constant 15 : i32
    %71 = vector.broadcast %c15_i32_21 : i32 to vector<16x128xi32>
    %72 = arith.shrsi %70, %71 : vector<16x128xi32>
    %c131071_i32_22 = arith.constant 131071 : i32
    %73 = vector.broadcast %c131071_i32_22 : i32 to vector<16x128xi32>
    %74 = arith.andi %72, %73 : vector<16x128xi32>
    %75 = arith.xori %70, %74 : vector<16x128xi32>
    %c-2073254261_i32_23 = arith.constant -2073254261 : i32
    %76 = vector.broadcast %c-2073254261_i32_23 : i32 to vector<16x128xi32>
    %77 = arith.muli %75, %76 : vector<16x128xi32>
    %c16_i32_24 = arith.constant 16 : i32
    %78 = vector.broadcast %c16_i32_24 : i32 to vector<16x128xi32>
    %79 = arith.shrsi %77, %78 : vector<16x128xi32>
    %c65535_i32_25 = arith.constant 65535 : i32
    %80 = vector.broadcast %c65535_i32_25 : i32 to vector<16x128xi32>
    %81 = arith.andi %79, %80 : vector<16x128xi32>
    %82 = arith.xori %77, %81 : vector<16x128xi32>
    %c0_i32_26 = arith.constant 0 : i32
    %83 = vector.broadcast %c0_i32_26 : i32 to vector<16x128xi32>
    %84 = arith.cmpi slt, %82, %83 : vector<16x128xi32>
    %cst_27 = arith.constant 2.000000e+00 : f32
    %85 = vector.broadcast %cst_27 : f32 to vector<16x128xf32>
    %86 = arith.mulf %52, %85 : vector<16x128xf32>
    %cst_28 = arith.constant 0.000000e+00 : f32
    %87 = vector.broadcast %cst_28 : f32 to vector<16x128xf32>
    %88 = arith.select %84, %86, %87 : vector<16x128xi1>, vector<16x128xf32>
    %c0_29 = arith.constant 0 : index
    %c0_30 = arith.constant 0 : index
    %89 = vector.load %arg7[%c0_29, %c0_30] : memref<16x128xf32, #tpu.memory_space<vmem>>, vector<16x128xf32>
    tpu.vector_store %arg7[%c0_29, %c0_30], %88 {strides = array<i32>} : memref<16x128xf32, #tpu.memory_space<vmem>>, vector<16x128xf32>,
    return
  }
  func.func @transform_0(%arg0: i32, %arg1: memref<1xi32, #tpu.memory_space<smem>>) -> (i32, i32) {
    %c0_i32 = arith.constant 0 : i32
    %c0_i32_0 = arith.constant 0 : i32
    return %arg0, %c0_i32 : i32, i32
  }
  func.func @transform_1(%arg0: i32, %arg1: memref<1xi32, #tpu.memory_space<smem>>) -> (i32, i32) {
    %c0_i32 = arith.constant 0 : i32
    %c0_i32_0 = arith.constant 0 : i32
    %c0_i32_1 = arith.constant 0 : i32
    return %c0_i32, %c0_i32_0 : i32, i32
  }
  func.func @transform_2(%arg0: i32, %arg1: memref<1xi32, #tpu.memory_space<smem>>) -> (i32, i32) {
    %c0_i32 = arith.constant 0 : i32
    %c0_i32_0 = arith.constant 0 : i32
    %c0_i32_1 = arith.constant 0 : i32
    return %c0_i32, %c0_i32_0 : i32, i32
  }
  func.func @transform_3(%arg0: i32, %arg1: memref<1xi32, #tpu.memory_space<smem>>) -> (i32, i32) {
    %c0_i32 = arith.constant 0 : i32
    %c0_i32_0 = arith.constant 0 : i32
    %c0_i32_1 = arith.constant 0 : i32
    return %c0_i32, %c0_i32_0 : i32, i32
  }
  func.func @transform_4(%arg0: i32, %arg1: memref<1xi32, #tpu.memory_space<smem>>) -> (i32, i32) {
    %c0_i32 = arith.constant 0 : i32
    %c0_i32_0 = arith.constant 0 : i32
    %c0_i32_1 = arith.constant 0 : i32
    return %c0_i32, %c0_i32_0 : i32, i32
  }
  func.func @transform_5(%arg0: i32, %arg1: memref<1xi32, #tpu.memory_space<smem>>) -> (i32, i32) {
    %c0_i32 = arith.constant 0 : i32
    %c0_i32_0 = arith.constant 0 : i32
    return %arg0, %c0_i32 : i32, i32
  }
}

</mosaic_0001>

<bundles_post_ra>
// kernel: tpu_custom_call.1
= control target key start
LH: loop header
LB: loop body
LE: loop exit
PB: predicated region body
PF: predicated region fallthrough
CT: control target
= control target key end

     0   :  { %12 = vsyncpa [#allocation5], 0  ;;  %s594_s0 = inlined_call_operand.<no memory space> [shape: s32[1], index: 0, kind: input, shape index: {}]   ;;  %s595_s1 = inlined_call_operand.hbm [shape: f32[16,32], index: 1, kind: input, shape index: {}]   ;;  %s596_s2 = inlined_call_operand.hbm [shape: bf16[32,128], index: 2, kind: input, shape index: {}]   ;;  %s597_s3 = inlined_call_operand.vmem [shape: f32[1,128], index: 3, kind: input, shape index: {}]   ;;  %s598_s4 = inlined_call_operand.hbm [shape: bf16[128,128], index: 4, kind: input, shape index: {}]   ;;  %s599_s5 = inlined_call_operand.vmem [shape: f32[1,128], index: 5, kind: input, shape index: {}]   ;;  %s600_s6 = inlined_call_operand.hbm [shape: f32[16,128], index: 6, kind: output, shape index: {}]  }
   0x1   :  { %13 = vsyncpa [#allocation8], 0 }
   0x2   :  { %14 = vsyncpa [#allocation6], 0  ;;  %s522_s21 = smov [#allocation7]  }
   0x3   :  { %s32_s22 = sshll.u32 %s522_s21, 4  ;;  %s33_s22 = int_to_ptr.vmem [resolvable:$true] %s32_s22 }
   0x4   :  { %s444_s23 = scalar_lea.vmem %s33_s22, 256  ;;  %p449_p1 = scmp.lt.s32.totalorder %s33_s22, %s33_s22 }
   0x5   :  { %p445_p0 = scmp.ne.s32.totalorder %s33_s22, %s444_s23  ;;  %p450_p2 = scmp.lt.s32.totalorder %s444_s23, %s444_s23 }
   0x7   :  { %p451_p3 = por %p450_p2, %p449_p1 }
   0x9   :  { %p452_p4 = pnand %p451_p3, %p445_p0 }
   0xb   :  { %455 = shalt.err (!%p452_p4)
}
   0xc   :  { %s523_s24 = smov 64   ;;  %s524_s25 = smov 4  }
   0xd   :  { %38 = dma.hbm_to_vmem [thread:$0]  %s596_s2, 256, %s33_s22, [#allocation8], %s523_s24, %s523_s24, %s524_s25  }
   0xe   :  { %s525_s28 = smov [#allocation4]  }
   0xf   :  { %s20_s29 = sshll.u32 %s525_s28, 4  ;;  %s21_s29 = int_to_ptr.vmem [resolvable:$true] %s20_s29 }
  0x10   :  { %s464_s30 = scalar_lea.vmem %s21_s29, 256  ;;  %p469_p6 = scmp.lt.s32.totalorder %s21_s29, %s21_s29 }
  0x11   :  { %p465_p5 = scmp.ne.s32.totalorder %s21_s29, %s464_s30  ;;  %p470_p7 = scmp.lt.s32.totalorder %s464_s30, %s464_s30 }
  0x13   :  { %p471_p8 = por %p470_p7, %p469_p6 }
  0x15   :  { %p472_p9 = pnand %p471_p8, %p465_p5 }
  0x17   :  { %475 = shalt.err (!%p472_p9)
}
  0x18   :  { %s526_s7 = smov 128   ;;  %s527_s8 = smov 8  }
  0x19   :  { %26 = dma.hbm_to_vmem [thread:$0]  %s595_s1, 256, %s21_s29, [#allocation5], %s526_s7, %s526_s7, %s527_s8  }
  0x1a   :  { %s528_s2 = smov [#allocation9]  }
  0x1b   :  { %s46_s11 = sshll.u32 %s528_s2, 4  ;;  %s47_s11 = int_to_ptr.vmem [resolvable:$true] %s46_s11 }
  0x1c   :  { %s484_s12 = scalar_lea.vmem %s47_s11, 1024  ;;  %p489_p11 = scmp.lt.s32.totalorder %s47_s11, %s47_s11 }
  0x1d   :  { %p485_p10 = scmp.ne.s32.totalorder %s47_s11, %s484_s12  ;;  %p490_p12 = scmp.lt.s32.totalorder %s484_s12, %s484_s12 }
  0x1f   :  { %p491_p13 = por %p490_p12, %p489_p11 }
  0x21   :  { %p492_p0 = pnand %p491_p13, %p485_p10 }
  0x23   :  { %495 = shalt.err (!%p492_p0)
}
  0x24   :  { %52 = dma.hbm_to_vmem [thread:$0]  %s598_s4, 1024, %s47_s11, [#allocation8], %s523_s24, %s523_s24, %s524_s25  }
  0x25   :  { %516 = dma.done.wait [#allocation5], 256  }
  0x26   :  { %517 = vsyncadd [#allocation5], 4294967040 }
  0x27   :  { %518 = dma.done.wait [#allocation8], 1280  }
  0x28   :  { %519 = vsyncadd [#allocation8], 4294966016  ;;  %v529_v0 = vmov 0.0   ;;  %vm530_vm0 = vmmov 0   ;;  %v426_v1 = vld [vmem:[#allocation7 + $0x8] sm:$0xff]   ;;  %v427_v2 = vld [vmem:[#allocation7] sm:$0xff]   ;;  %v140_v14 = vlaneseq  ;;  %v152_v22 = vstv %s594_s0 }
  0x29   :  { %388 = vmatprep.subr.bf16.mxu0 %v529_v0  ;;  %392 = vmatprep.mubr.msk.bf16.mxu0 %vm530_vm0, %v529_v0  ;;  %v67_v3 = vld [vmem:[#allocation4] sm:$0xff]  ;;  %v68_v4 = vld [vmem:[#allocation4 + $0x8] sm:$0xff]  ;;  %v428_v5 = vld [vmem:[#allocation9 + $0x38] sm:$0xff]   ;;  %vm93_vm1 = vcmask 261120   ;;  %s531_s17 = smov [#allocation10]  }
  0x2a   :  { %396 = vmatprep.subr.bf16.mxu1 %v529_v0  ;;  %412 = vmatprep.mubr.msk.bf16.mxu1 %vm530_vm0, %v529_v0  ;;  %v69_v6 = vpack.c.bf16 %v68_v4, %v67_v3  ;;  %v429_v7 = vld [vmem:[#allocation9 + $0x30] sm:$0xff]   ;;  %v430_v8 = vld [vmem:[#allocation9 + $0x28] sm:$0xff]   ;;  %v431_v9 = vld [vmem:[#allocation9 + $0x20] sm:$0xff]   ;;  %v141_v15 = vshrl.u32 %v140_v14, 7  ;;  %v147_v17 = vand.u32 127, %v140_v14  ;;  %s335_s18 = sshll.u32 %s531_s17, 4  ;;  %s336_s18 = int_to_ptr.vmem [resolvable:$true] %s335_s18 }
  0x2b   :  { %389 = vmatpush3.bf16.msra.mxu0 %v426_v1  ;;  %397 = vmatpush3.bf16.msra.mxu1 %v428_v5  ;;  %v432_v10 = vld [vmem:[#allocation9 + $0x18] sm:$0xff]   ;;  %v433_v11 = vld [vmem:[#allocation9 + $0x10] sm:$0xff]   ;;  %v434_v12 = vld [vmem:[#allocation9 + $0x8] sm:$0xff]   ;;  %p501_p2 = scmp.lt.s32.totalorder %s336_s18, %s336_s18 }
  0x2c   :  { %390 = vmatprep.subr.bf16.mxu0 %v529_v0  ;;  %398 = vmatprep.subr.bf16.mxu1 %v529_v0  ;;  %v435_v13 = vld [vmem:[#allocation9] sm:$0xff]   ;;  %v142_v16 = vadd.s32 8, %v141_v15  ;;  %v148_v18 = vmul.u32 128, %v141_v15 }
  0x2d   :  { %v348_v41 = vld [vmem:[%s597_s3] ss:$0 sm:$0xff] }
  0x2e   :  { %v149_v19 = vmul.u32 128, %v142_v16  ;;  %v150_v20 = vadd.s32 %v148_v18, %v147_v17  ;;  %v358_v4 = vld [vmem:[%s599_s5] ss:$0 sm:$0xff]  ;;  %s496_s5 = scalar_lea.vmem %s336_s18, 256 }
  0x2f   :  { %391 = vmatpush3.bf16.msra.mxu0 %v427_v2  ;;  %399 = vmatpush3.bf16.msra.mxu1 %v429_v7  ;;  %p497_p1 = scmp.ne.s32.totalorder %s336_s18, %s496_s5  ;;  %p502_p3 = scmp.lt.s32.totalorder %s496_s5, %s496_s5 }
  0x30   :  { %400 = vmatprep.subr.bf16.mxu1 %v529_v0  ;;  %v151_v21 = vadd.s32 %v149_v19, %v147_v17  ;;  %v153_v23 = vxor.u32 %v152_v22, %v150_v20 }
  0x31   :  { %p503_p4 = por %p502_p3, %p501_p2 }
  0x32   :  { %393 = vmatmul.mubr.msk.bf16.vlgmr.msra.gmra.mxu0 %vm93_vm1, %v69_v6  ;;  %v154_v24 = vxor.u32 %v152_v22, %v151_v21  ;;  %v155_v25 = vxor.u32 1013904223, %v153_v23  ;;  %v298_v53 = vxor.u32 668265263, %v153_v23 }
  0x33   :  { %401 = vmatpush3.bf16.msra.mxu1 %v430_v8  ;;  %p504_p5 = pnand %p503_p4, %p497_p1 }
  0x34   :  { %402 = vmatprep.subr.bf16.mxu1 %v529_v0  ;;  %v156_v26 = vxor.u32 1013904223, %v154_v24  ;;  %v352_v27 = vshrl.u32 %v155_v25, 16  ;;  %v370_v54 = vshrl.u32 %v298_v53, 16  ;;  %v299_v55 = vxor.u32 668265263, %v154_v24 }
  0x36   :  { %v353_v28 = vshrl.u32 %v156_v26, 16  ;;  %v161_v29 = vxor.u32 %v352_v27, %v155_v25  ;;  %v304_v56 = vxor.u32 %v370_v54, %v298_v53  ;;  %v371_v57 = vshrl.u32 %v299_v55, 16 }
  0x37   :  { %403 = vmatpush3.bf16.msra.mxu1 %v431_v9 }
  0x38   :  { %404 = vmatprep.subr.bf16.mxu1 %v529_v0  ;;  %v162_v30 = vxor.u32 %v353_v28, %v156_v26  ;;  %v163_v31 = vmul.u32 2146121005, %v161_v29  ;;  %v306_v58 = vmul.u32 2146121005, %v304_v56  ;;  %v305_v59 = vxor.u32 %v371_v57, %v299_v55 }
  0x3a   :  { %v164_v32 = vmul.u32 2146121005, %v162_v30  ;;  %v354_v33 = vshrl.u32 %v163_v31, 15  ;;  %v372_v60 = vshrl.u32 %v306_v58, 15  ;;  %v307_v61 = vmul.u32 2146121005, %v305_v59 }
  0x3b   :  { %405 = vmatpush3.bf16.msra.mxu1 %v432_v10 }
  0x3c   :  { %406 = vmatprep.subr.bf16.mxu1 %v529_v0  ;;  %v355_v34 = vshrl.u32 %v164_v32, 15  ;;  %v169_v35 = vxor.u32 %v354_v33, %v163_v31  ;;  %v312_v62 = vxor.u32 %v372_v60, %v306_v58  ;;  %v373_v63 = vshrl.u32 %v307_v61, 15 }
  0x3e   :  { %v170_v36 = vxor.u32 %v355_v34, %v164_v32  ;;  %v171_v37 = vmul.u32 2221713035, %v169_v35  ;;  %v313_v1 = vxor.u32 %v373_v63, %v307_v61 }
  0x3f   :  { %407 = vmatpush3.bf16.msra.mxu1 %v433_v11 }
  0x40   :  { %408 = vmatprep.subr.bf16.mxu1 %v529_v0  ;;  %v172_v38 = vmul.u32 2221713035, %v170_v36  ;;  %v356_v39 = vshrl.u32 %v171_v37, 16  ;;  %v315_v3 = vmul.u32 2221713035, %v313_v1 }
  0x42   :  { %v357_v40 = vshrl.u32 %v172_v38, 16  ;;  %v177_v43 = vxor.u32 %v356_v39, %v171_v37  ;;  %v375_v7 = vshrl.u32 %v315_v3, 16 }
  0x43   :  { %409 = vmatpush3.bf16.msra.mxu1 %v434_v12 }
  0x44   :  { %410 = vmatprep.subr.bf16.mxu1 %v529_v0  ;;  %v178_v44 = vxor.u32 %v357_v40, %v172_v38  ;;  %vm179_vm2 = vcmp.lt.s32.totalorder %v177_v43, 0  ;;  %v314_v0 = vmul.u32 2221713035, %v312_v62  ;;  %v321_v12 = vxor.u32 %v375_v7, %v315_v3 }
  0x46   :  { %vm180_vm3 = vcmp.lt.s32.totalorder %v178_v44, 0  ;;  %v374_v2 = vshrl.u32 %v314_v0, 16  ;;  %vm323_vm6 = vcmp.lt.s32.totalorder %v321_v12, 0 }
  0x47   :  { %411 = vmatpush3.bf16.msra.mxu1 %v435_v13  ;;  %vm367_vm4 = vmpackc.low %vm180_vm3, %vm179_vm2 }
  0x48   :  { %v320_v6 = vxor.u32 %v374_v2, %v314_v0 }
  0x4a   :  { %vm322_vm5 = vcmp.lt.s32.totalorder %v320_v6, 0 }
  0xf2   :  { %v131_v42 = vpop.f32.mrf.mxu0 }
  0xf3   :  { %v132_v46 = vadd.f32 %v348_v41, %v131_v42 }
  0xf4   :  { %v394_v45 = vpop.f32.mrf.mxu0 }
  0xf5   :  { %v138_v50 = vmax.f32 %v132_v46, 0.0 }
  0xf6   :  { %v134_v47 = vpop.f32.mrf.mxu0 }
  0xf7   :  { %v135_v48 = vadd.f32 %v348_v41, %v134_v47 }
  0xf8   :  { %v395_v49 = vpop.f32.mrf.mxu0 }
  0xf9   :  { %v139_v51 = vmax.f32 %v135_v48, 0.0 }
  0xfb   :  { %v368_v52 = vpack.c.bf16 %v139_v51, %v138_v50 }
  0xfd   :  { %413 = vmatmul.mubr.msk.bf16.vlgmr.msra.gmra.mxu1 %vm367_vm4, %v368_v52 }
 0x1bd   :  { %v289_v5 = vpop.f32.mrf.mxu1 }
 0x1be   :  { %v290_v8 = vadd.f32 %v358_v4, %v289_v5 }
 0x1bf   :  { %v414_v9 = vpop.f32.mrf.mxu1 }
 0x1c0   :  { %v296_v10 = vmax.f32 %v290_v8, 0.0 }
 0x1c1   :  { %v292_v11 = vpop.f32.mrf.mxu1 }
 0x1c2   :  { %v324_v13 = vmul.f32 2.0, %v296_v10  ;;  %v293_v14 = vadd.f32 %v358_v4, %v292_v11 }
 0x1c3   :  { %v415_v15 = vpop.f32.mrf.mxu1 }
 0x1c4   :  { %v326_v16 = vsel %vm322_vm5, %v324_v13, 0.0  ;;  %v297_v17 = vmax.f32 %v293_v14, 0.0 }
 0x1c5   :  { %328 = vst [vmem:[#allocation10] sm:$0xff] %v326_v16 }
 0x1c6   :  { %v325_v18 = vmul.f32 2.0, %v297_v17 }
 0x1c8   :  { %v327_v19 = vsel %vm323_vm6, %v325_v18, 0.0 }
 0x1c9   :  { %329 = vst [vmem:[#allocation10 + $0x8] sm:$0xff] %v327_v19 }
 0x1ca   :  { %507 = shalt.err (!%p504_p5)
}
 0x1cb   :  { %341 = dma.vmem_to_hbm [thread:$0]  %s336_s18, 256, %s600_s6, [#allocation6], %s526_s7, %s526_s7, %s527_s8  }
 0x1cc   :  { %520 = dma.done.wait [#allocation6], 256  }
 0x1cd   :  { %521 = vsyncadd [#allocation6], 4294967040 }
 0x1ce   :  { %345 = vsyncpa [#allocation5], 1 }
 0x1cf   :  { %346 = vsyncpa [#allocation8], 1 }
 0x1d0   :  { %347 = vsyncpa [#allocation6], 1 }

</bundles_post_ra>
